<compile_context>
chip_gen: v6e
topology: v6e:2x2x1
jax: 0.10.0
libtpu: 0.0.40
codegen_flags: <defaults>
</compile_context>

<pallas_src>
import math

import jax
import jax.numpy as jnp
from jax.experimental import pallas as pl
from jax.experimental.pallas import tpu as pltpu


def _round_up(x, m):
    return ((x + m - 1) // m) * m


def _default_max_tile():
    """v5e: single vector-store slot + no bf16 VALU -> cap tiles at 512; else 1024."""
    try:
        kind = jax.devices()[0].device_kind.lower()
    except Exception:
        kind = ""
    return 512 if "v5" in kind else 1024


def _make_actor_kernel(in_dim):
    def kernel(x_ref, w1_ref, b1_ref, w2_ref, b2_ref, w3_ref, b3_ref, out_ref):
        x = x_ref[...]                                     # (tb, in_dim) f32, unpadded

        # fc1 on the VPU: in_dim broadcast-FMAs against the unpadded (in_dim, fc1) w1.
        # No 128-wide K padding, no MXU, no bf16 cast of x.
        h1 = b1_ref[...] + x[:, 0:1] * w1_ref[0:1, :]
        for k in range(1, in_dim):
            h1 = h1 + x[:, k:k + 1] * w1_ref[k:k + 1, :]
        h1 = jnp.maximum(h1, 0.0).astype(jnp.bfloat16)     # bf16 right after ReLU

        # fc2 + ReLU on the MXU, f32 accumulation, f32 bias/ReLU.
        h2 = jnp.dot(h1, w2_ref[...], preferred_element_type=jnp.float32)
        h2 = jnp.maximum(h2 + b2_ref[...], 0.0).astype(jnp.bfloat16)

        # fc3 logits (output lane-padded to 128; pad lanes get a -1e30 bias from b3,
        # so they vanish in the softmax without an explicit mask).
        logits = jnp.dot(h2, w3_ref[...], preferred_element_type=jnp.float32)
        logits = logits + b3_ref[...]

        # Numerically stable softmax with exact normalization (PPO log-prob friendly).
        m = jnp.max(logits, axis=-1, keepdims=True)
        e = jnp.exp(logits - m)
        denom = jnp.sum(e, axis=-1, keepdims=True)
        out_ref[...] = (e / denom).astype(out_ref.dtype)

    return kernel


def init_params(key, input_dim=4, fc1_dims=256, fc2_dims=256, n_actions=2):
    """torch.nn.Linear default init (U[-1/sqrt(fan_in), 1/sqrt(fan_in)]); W stored (in, out)."""
    keys = jax.random.split(key, 6)

    def linear_init(kw, kb, fan_in, fan_out):
        bound = 1.0 / math.sqrt(fan_in)
        w = jax.random.uniform(kw, (fan_in, fan_out), jnp.float32, -bound, bound)
        b = jax.random.uniform(kb, (1, fan_out), jnp.float32, -bound, bound)
        return w, b

    w1, b1 = linear_init(keys[0], keys[1], input_dim, fc1_dims)
    w2, b2 = linear_init(keys[2], keys[3], fc1_dims, fc2_dims)
    w3, b3 = linear_init(keys[4], keys[5], fc2_dims, n_actions)
    return {"w1": w1, "b1": b1, "w2": w2, "b2": b2, "w3": w3, "b3": b3}


def prepare_params(params):
    """One-time cast/pad of the f32 master params into the kernel layout.

    - w1 stays f32 and UNPADDED (fc1 runs on the VPU).
    - w2 / w3 in bf16 for the MXU; fc3 outputs zero-padded to 128 lanes.
    - b3 pad lanes carry -1e30 so padded logits vanish in the softmax.
    """
    in_dim, _ = params["w1"].shape
    fc2, n_act = params["w3"].shape
    a_pad = _round_up(n_act, 128)

    w3 = jnp.zeros((fc2, a_pad), jnp.float32).at[:, :n_act].set(params["w3"])
    b3 = jnp.full((1, a_pad), -1e30, jnp.float32).at[:, :n_act].set(params["b3"])

    return {
        "w1": params["w1"].astype(jnp.float32),
        "b1": params["b1"].astype(jnp.float32),
        "w2": params["w2"].astype(jnp.bfloat16),
        "b2": params["b2"].astype(jnp.float32),
        "w3": w3.astype(jnp.bfloat16),
        "b3": b3,
        "input_dim": in_dim,
        "n_actions": n_act,
    }


def actor_forward(x, prepped, max_block_b=None):
    """x: (B, input_dim) f32  ->  (B, n_actions) f32 action probabilities."""
    B, in_dim = x.shape
    assert in_dim == prepped["input_dim"]
    n_actions = prepped["n_actions"]
    fc1 = prepped["w1"].shape[1]
    fc2, a_pad = prepped["w3"].shape

    if max_block_b is None:
        max_block_b = _default_max_tile()

    # Large batch tiles (per-step pipeline overhead dominates this tiny MLP); when the
    # batch splits, aim for an even grid so v7x's two TensorCores stay balanced.
    tb = max(8, min(max_block_b, _round_up(pl.cdiv(B, 2), 8)))
    b_pad = _round_up(B, tb)
    grid = (b_pad // tb,)

    # Only the batch (sublane) dim is padded, in f32 — tiny compared with the old
    # 128-lane padded bf16 copy.
    x_in = x if b_pad == B else jnp.pad(x, ((0, b_pad - B), (0, 0)))

    const = lambda i: (0, 0)   # weights/biases: same block every step -> VMEM-resident

    # Honest cost estimate with real (unpadded) dims.
    flops = 2 * B * (in_dim * fc1 + fc1 * fc2 + fc2 * n_actions)
    bytes_accessed = (
        x.size * 4 + B * n_actions * 2
        + prepped["w1"].size * 4
        + (prepped["w2"].size + prepped["w3"].size) * 2
        + (prepped["b1"].size + prepped["b2"].size + prepped["b3"].size) * 4
    )

    out = pl.pallas_call(
        _make_actor_kernel(in_dim),
        out_shape=jax.ShapeDtypeStruct((b_pad, a_pad), jnp.bfloat16),
        grid=grid,
        in_specs=[
            pl.BlockSpec((tb, in_dim), lambda i: (i, 0)),   # x streams over the batch
            pl.BlockSpec((in_dim, fc1), const),
            pl.BlockSpec((1, fc1), const),
            pl.BlockSpec((fc1, fc2), const),
            pl.BlockSpec((1, fc2), const),
            pl.BlockSpec((fc2, a_pad), const),
            pl.BlockSpec((1, a_pad), const),
        ],
        out_specs=pl.BlockSpec((tb, a_pad), lambda i: (i, 0)),
        compiler_params=pltpu.CompilerParams(
            dimension_semantics=("parallel",)),
        cost_estimate=pl.CostEstimate(
            flops=flops,
            transcendentals=B * n_actions,
            bytes_accessed=bytes_accessed),
    )(
        x_in,
        prepped["w1"], prepped["b1"],
        prepped["w2"], prepped["b2"],
        prepped["w3"], prepped["b3"],
    )

    # Drop batch / lane padding -> Categorical probs (f32 for downstream PPO math).
    return out[:B, :n_actions].astype(jnp.float32)


if __name__ == "__main__":
    key = jax.random.PRNGKey(0)
    k_params, k_x1, k_x2 = jax.random.split(key, 3)

    input_dim, fc1_dims, fc2_dims, n_actions = 4, 256, 256, 2

    params = init_params(k_params, input_dim, fc1_dims, fc2_dims, n_actions)
    prepped = prepare_params(params)

    def reference(x):
        h1 = jnp.maximum(x @ params["w1"] + params["b1"], 0.0)
        h2 = jnp.maximum(h1 @ params["w2"] + params["b2"], 0.0)
        return jax.nn.softmax(h2 @ params["w3"] + params["b3"], axis=-1)

    # Small per-env-step batch (single grid step).
    x_small = jax.random.normal(k_x1, (8, input_dim), jnp.float32)
    p_small = jax.block_until_ready(actor_forward(x_small, prepped))

    # Rollout-sized batch: splits into an even grid (2 tiles of 304 rows).
    x_big = jax.random.normal(k_x2, (600, input_dim), jnp.float32)
    p_big = jax.block_until_ready(actor_forward(x_big, prepped))

    for probs, x in ((p_small, x_small), (p_big, x_big)):
        assert probs.shape == (x.shape[0], n_actions)
        assert bool(jnp.all(jnp.abs(jnp.sum(probs, axis=-1) - 1.0) < 1e-2))
        assert bool(jnp.allclose(probs, reference(x), atol=2e-2))

    # TODO(synk): torch forward() returns a Categorical distribution object; the kernel
    # returns its `probs` tensor (sampling / log_prob stay host-side glue).
    print("KERNEL_OK")
</pallas_src>

<mosaic_0001>
module attributes {stable_mosaic.version = 11 : i64} {
  func.func @kernel(%arg0: i32, %arg1: memref<8x4xf32, #tpu.memory_space<vmem>>, %arg2: memref<4x256xf32, #tpu.memory_space<vmem>>, %arg3: memref<1x256xf32, #tpu.memory_space<vmem>>, %arg4: memref<256x256xbf16, #tpu.memory_space<vmem>>, %arg5: memref<1x256xf32, #tpu.memory_space<vmem>>, %arg6: memref<256x128xbf16, #tpu.memory_space<vmem>>, %arg7: memref<1x128xf32, #tpu.memory_space<vmem>>, %arg8: memref<8x128xbf16, #tpu.memory_space<vmem>>) attributes {dimension_semantics = [#tpu.dimension_semantics<parallel>], iteration_bounds = array<i64: 1>, scalar_prefetch = 0 : i64, scratch_operands = 0 : i64, tpu.core_type = #tpu.core_type<tc>, window_params = [{transform_indices = @transform_0, window_bounds = array<i64: 8, 4>}, {pipeline_mode = #tpu.pipeline_mode<synchronous>, transform_indices = @transform_1, window_bounds = array<i64: 4, 256>}, {pipeline_mode = #tpu.pipeline_mode<synchronous>, transform_indices = @transform_2, window_bounds = array<i64: 1, 256>}, {pipeline_mode = #tpu.pipeline_mode<synchronous>, transform_indices = @transform_3, window_bounds = array<i64: 256, 256>}, {pipeline_mode = #tpu.pipeline_mode<synchronous>, transform_indices = @transform_4, window_bounds = array<i64: 1, 256>}, {pipeline_mode = #tpu.pipeline_mode<synchronous>, transform_indices = @transform_5, window_bounds = array<i64: 256, 128>}, {pipeline_mode = #tpu.pipeline_mode<synchronous>, transform_indices = @transform_6, window_bounds = array<i64: 1, 128>}, {transform_indices = @transform_7, window_bounds = array<i64: 8, 128>}]} {
    %c0 = arith.constant 0 : index
    %c0_0 = arith.constant 0 : index
    %0 = vector.load %arg1[%c0, %c0_0] : memref<8x4xf32, #tpu.memory_space<vmem>>, vector<8x4xf32>
    %c0_1 = arith.constant 0 : index
    %c0_2 = arith.constant 0 : index
    %1 = vector.load %arg3[%c0_1, %c0_2] : memref<1x256xf32, #tpu.memory_space<vmem>>, vector<1x256xf32>
    %2 = vector.extract_strided_slice %0 {offsets = [0, 0], sizes = [8, 1], strides = [1, 1]} : vector<8x4xf32> to vector<8x1xf32>
    %c0_3 = arith.constant 0 : index
    %c0_4 = arith.constant 0 : index
    %3 = vector.load %arg2[%c0_3, %c0_4] : memref<4x256xf32, #tpu.memory_space<vmem>>, vector<1x256xf32>
    %4 = vector.broadcast %2 : vector<8x1xf32> to vector<8x256xf32>
    %5 = vector.broadcast %3 : vector<1x256xf32> to vector<8x256xf32>
    %6 = arith.mulf %4, %5 : vector<8x256xf32>
    %7 = vector.broadcast %1 : vector<1x256xf32> to vector<8x256xf32>
    %8 = arith.addf %7, %6 : vector<8x256xf32>
    %9 = vector.extract_strided_slice %0 {offsets = [0, 1], sizes = [8, 1], strides = [1, 1]} : vector<8x4xf32> to vector<8x1xf32>
    %c1 = arith.constant 1 : index
    %c0_5 = arith.constant 0 : index
    %10 = vector.load %arg2[%c1, %c0_5] : memref<4x256xf32, #tpu.memory_space<vmem>>, vector<1x256xf32>
    %11 = vector.broadcast %9 : vector<8x1xf32> to vector<8x256xf32>
    %12 = vector.broadcast %10 : vector<1x256xf32> to vector<8x256xf32>
    %13 = arith.mulf %11, %12 : vector<8x256xf32>
    %14 = arith.addf %8, %13 : vector<8x256xf32>
    %15 = vector.extract_strided_slice %0 {offsets = [0, 2], sizes = [8, 1], strides = [1, 1]} : vector<8x4xf32> to vector<8x1xf32>
    %c2 = arith.constant 2 : index
    %c0_6 = arith.constant 0 : index
    %16 = vector.load %arg2[%c2, %c0_6] : memref<4x256xf32, #tpu.memory_space<vmem>>, vector<1x256xf32>
    %17 = vector.broadcast %15 : vector<8x1xf32> to vector<8x256xf32>
    %18 = vector.broadcast %16 : vector<1x256xf32> to vector<8x256xf32>
    %19 = arith.mulf %17, %18 : vector<8x256xf32>
    %20 = arith.addf %14, %19 : vector<8x256xf32>
    %21 = vector.extract_strided_slice %0 {offsets = [0, 3], sizes = [8, 1], strides = [1, 1]} : vector<8x4xf32> to vector<8x1xf32>
    %c3 = arith.constant 3 : index
    %c0_7 = arith.constant 0 : index
    %22 = vector.load %arg2[%c3, %c0_7] : memref<4x256xf32, #tpu.memory_space<vmem>>, vector<1x256xf32>
    %23 = vector.broadcast %21 : vector<8x1xf32> to vector<8x256xf32>
    %24 = vector.broadcast %22 : vector<1x256xf32> to vector<8x256xf32>
    %25 = arith.mulf %23, %24 : vector<8x256xf32>
    %26 = arith.addf %20, %25 : vector<8x256xf32>
    %cst = arith.constant 0.000000e+00 : f32
    %27 = vector.broadcast %cst : f32 to vector<8x256xf32>
    %28 = arith.maximumf %26, %27 : vector<8x256xf32>
    %29 = arith.truncf %28 : vector<8x256xf32> to vector<8x256xbf16>
    %c0_8 = arith.constant 0 : index
    %c0_9 = arith.constant 0 : index
    %30 = vector.load %arg4[%c0_8, %c0_9] : memref<256x256xbf16, #tpu.memory_space<vmem>>, vector<256x256xbf16>
    %cst_10 = arith.constant dense<0.000000e+00> : vector<8x256xf32>
    %31 = tpu.matmul %29, %30, %cst_10 {dimension_numbers = #tpu.dot_dimension_numbers<[1], [0], [0], [1], [0, 0, 1, 1], [], []>} : vector<8x256xbf16>, vector<256x256xbf16>, vector<8x256xf32> -> vector<8x256xf32>
    %c0_11 = arith.constant 0 : index
    %c0_12 = arith.constant 0 : index
    %32 = vector.load %arg5[%c0_11, %c0_12] : memref<1x256xf32, #tpu.memory_space<vmem>>, vector<1x256xf32>
    %33 = vector.broadcast %32 : vector<1x256xf32> to vector<8x256xf32>
    %34 = arith.addf %31, %33 : vector<8x256xf32>
    %cst_13 = arith.constant 0.000000e+00 : f32
    %35 = vector.broadcast %cst_13 : f32 to vector<8x256xf32>
    %36 = arith.maximumf %34, %35 : vector<8x256xf32>
    %37 = arith.truncf %36 : vector<8x256xf32> to vector<8x256xbf16>
    %c0_14 = arith.constant 0 : index
    %c0_15 = arith.constant 0 : index
    %38 = vector.load %arg6[%c0_14, %c0_15] : memref<256x128xbf16, #tpu.memory_space<vmem>>, vector<256x128xbf16>
    %cst_16 = arith.constant dense<0.000000e+00> : vector<8x128xf32>
    %39 = tpu.matmul %37, %38, %cst_16 {dimension_numbers = #tpu.dot_dimension_numbers<[1], [0], [0], [1], [0, 0, 1, 1], [], []>} : vector<8x256xbf16>, vector<256x128xbf16>, vector<8x128xf32> -> vector<8x128xf32>
    %c0_17 = arith.constant 0 : index
    %c0_18 = arith.constant 0 : index
    %40 = vector.load %arg7[%c0_17, %c0_18] : memref<1x128xf32, #tpu.memory_space<vmem>>, vector<1x128xf32>
    %41 = vector.broadcast %40 : vector<1x128xf32> to vector<8x128xf32>
    %42 = arith.addf %39, %41 : vector<8x128xf32>
    %cst_19 = arith.constant dense<0xFF800000> : vector<8xf32>
    %43 = vector.multi_reduction <maximumf>, %42, %cst_19 [1] : vector<8x128xf32> to vector<8xf32>
    %44 = vector.shape_cast %43 : vector<8xf32> to vector<8x1xf32>
    %45 = vector.broadcast %44 : vector<8x1xf32> to vector<8x128xf32>
    %46 = arith.subf %42, %45 : vector<8x128xf32>
    %47 = math.exp %46 : vector<8x128xf32>
    %cst_20 = arith.constant dense<0.000000e+00> : vector<8xf32>
    %48 = vector.multi_reduction <add>, %47, %cst_20 [1] : vector<8x128xf32> to vector<8xf32>
    %49 = vector.shape_cast %48 : vector<8xf32> to vector<8x1xf32>
    %50 = vector.broadcast %49 : vector<8x1xf32> to vector<8x128xf32>
    %51 = arith.divf %47, %50 : vector<8x128xf32>
    %52 = arith.truncf %51 : vector<8x128xf32> to vector<8x128xbf16>
    %c0_21 = arith.constant 0 : index
    %c0_22 = arith.constant 0 : index
    %53 = vector.load %arg8[%c0_21, %c0_22] : memref<8x128xbf16, #tpu.memory_space<vmem>>, vector<8x128xbf16>
    tpu.vector_store %arg8[%c0_21, %c0_22], %52 {strides = array<i32>} : memref<8x128xbf16, #tpu.memory_space<vmem>>, vector<8x128xbf16>,
    return
  }
  func.func @transform_0(%arg0: i32) -> (i32, i32) {
    %c0_i32 = arith.constant 0 : i32
    %c0_i32_0 = arith.constant 0 : i32
    return %arg0, %c0_i32 : i32, i32
  }
  func.func @transform_1(%arg0: i32) -> (i32, i32) {
    %c0_i32 = arith.constant 0 : i32
    %c0_i32_0 = arith.constant 0 : i32
    %c0_i32_1 = arith.constant 0 : i32
    return %c0_i32, %c0_i32_0 : i32, i32
  }
  func.func @transform_2(%arg0: i32) -> (i32, i32) {
    %c0_i32 = arith.constant 0 : i32
    %c0_i32_0 = arith.constant 0 : i32
    %c0_i32_1 = arith.constant 0 : i32
    return %c0_i32, %c0_i32_0 : i32, i32
  }
  func.func @transform_3(%arg0: i32) -> (i32, i32) {
    %c0_i32 = arith.constant 0 : i32
    %c0_i32_0 = arith.constant 0 : i32
    %c0_i32_1 = arith.constant 0 : i32
    return %c0_i32, %c0_i32_0 : i32, i32
  }
  func.func @transform_4(%arg0: i32) -> (i32, i32) {
    %c0_i32 = arith.constant 0 : i32
    %c0_i32_0 = arith.constant 0 : i32
    %c0_i32_1 = arith.constant 0 : i32
    return %c0_i32, %c0_i32_0 : i32, i32
  }
  func.func @transform_5(%arg0: i32) -> (i32, i32) {
    %c0_i32 = arith.constant 0 : i32
    %c0_i32_0 = arith.constant 0 : i32
    %c0_i32_1 = arith.constant 0 : i32
    return %c0_i32, %c0_i32_0 : i32, i32
  }
  func.func @transform_6(%arg0: i32) -> (i32, i32) {
    %c0_i32 = arith.constant 0 : i32
    %c0_i32_0 = arith.constant 0 : i32
    %c0_i32_1 = arith.constant 0 : i32
    return %c0_i32, %c0_i32_0 : i32, i32
  }
  func.func @transform_7(%arg0: i32) -> (i32, i32) {
    %c0_i32 = arith.constant 0 : i32
    %c0_i32_0 = arith.constant 0 : i32
    return %arg0, %c0_i32 : i32, i32
  }
}

</mosaic_0001>

<bundles_post_ra>
// kernel: tpu_custom_call.1
= control target key start
LH: loop header
LB: loop body
LE: loop exit
PB: predicated region body
PF: predicated region fallthrough
CT: control target
= control target key end

     0   :  { %12 = vsyncpa [#allocation3], 0  ;;  %s916_s0 = inlined_call_operand.vmem [shape: f32[8,4], index: 0, kind: input, shape index: {}]   ;;  %s917_s1 = inlined_call_operand.vmem [shape: f32[4,256], index: 1, kind: input, shape index: {}]   ;;  %s918_s2 = inlined_call_operand.vmem [shape: f32[1,256], index: 2, kind: input, shape index: {}]   ;;  %s919_s3 = inlined_call_operand.hbm [shape: bf16[256,256], index: 3, kind: input, shape index: {}]   ;;  %s920_s4 = inlined_call_operand.vmem [shape: f32[1,256], index: 4, kind: input, shape index: {}]   ;;  %s921_s5 = inlined_call_operand.hbm [shape: bf16[256,128], index: 5, kind: input, shape index: {}]   ;;  %s922_s6 = inlined_call_operand.vmem [shape: f32[1,128], index: 6, kind: input, shape index: {}]   ;;  %s923_s7 = inlined_call_operand.hbm [shape: bf16[8,128], index: 7, kind: output, shape index: {}]  }
   0x1   :  { %13 = vsyncpa [#allocation6], 0 }
   0x2   :  { %14 = vsyncpa [#allocation4], 0  ;;  %s832_s24 = smov [#allocation2]  }
   0x3   :  { %s26_s25 = sshll.u32 %s832_s24, 4  ;;  %s27_s25 = int_to_ptr.vmem [resolvable:$true] %s26_s25 }
   0x4   :  { %s774_s26 = scalar_lea.vmem %s27_s25, 4096  ;;  %p779_p1 = scmp.lt.s32.totalorder %s27_s25, %s27_s25 }
   0x5   :  { %p775_p0 = scmp.ne.s32.totalorder %s27_s25, %s774_s26  ;;  %p780_p2 = scmp.lt.s32.totalorder %s774_s26, %s774_s26 }
   0x7   :  { %p781_p3 = por %p780_p2, %p779_p1 }
   0x9   :  { %p782_p4 = pnand %p781_p3, %p775_p0 }
   0xb   :  { %785 = shalt.err (!%p782_p4)
}
   0xc   :  { %s833_s27 = smov 128   ;;  %s834_s28 = smov 8  }
   0xd   :  { %32 = dma.hbm_to_vmem [thread:$0]  %s919_s3, 4096, %s27_s25, [#allocation3], %s833_s27, %s833_s27, %s834_s28  }
   0xe   :  { %s835_s8 = smov [#allocation5]  }
   0xf   :  { %s40_s9 = sshll.u32 %s835_s8, 4  ;;  %s41_s9 = int_to_ptr.vmem [resolvable:$true] %s40_s9 }
  0x10   :  { %s794_s10 = scalar_lea.vmem %s41_s9, 2048  ;;  %p799_p6 = scmp.lt.s32.totalorder %s41_s9, %s41_s9 }
  0x11   :  { %p795_p5 = scmp.ne.s32.totalorder %s41_s9, %s794_s10  ;;  %p800_p7 = scmp.lt.s32.totalorder %s794_s10, %s794_s10 }
  0x13   :  { %p801_p8 = por %p800_p7, %p799_p6 }
  0x15   :  { %p802_p9 = pnand %p801_p8, %p795_p5 }
  0x17   :  { %805 = shalt.err (!%p802_p9)
}
  0x18   :  { %s836_s11 = smov 64   ;;  %s837_s12 = smov 4  }
  0x19   :  { %46 = dma.hbm_to_vmem [thread:$0]  %s921_s5, 2048, %s41_s9, [#allocation6], %s836_s11, %s836_s11, %s837_s12  }
  0x1a   :  { %826 = dma.done.wait [#allocation3], 4096  }
  0x1b   :  { %827 = vsyncadd [#allocation3], 4294963200 }
  0x1c   :  { %828 = dma.done.wait [#allocation6], 2048  }
  0x1d   :  { %829 = vsyncadd [#allocation6], 4294965248  ;;  %v838_v0 = vmov 0   ;;  %v839_v1 = vmov 2   ;;  %v56_v2 = vld [vmem:[%s916_s0] sm:$0xff]  ;;  %v840_v7 = vmov 1   ;;  %v65_v49 = vlaneseq }
  0x1e   :  { %693 = vset.pattern.permute.xlu0 %v838_v0  ;;  %695 = vset.pattern.permute.xlu1 %v839_v1  ;;  %v698_v3 = vld [vmem:[#allocation2 + $0x74] ss:$8 sps:$4 sm:$0xff]   ;;  %v700_v4 = vld [vmem:[#allocation2 + $0x70] ss:$8 sps:$4 sm:$0xff]   ;;  %v701_v5 = vld [vmem:[#allocation2 + $0x64] ss:$8 sps:$4 sm:$0xff]  }
  0x1f   :  { %61 = vperm.xlu0 %693, %v56_v2   ;;  %114 = vperm.xlu1 %695, %v56_v2   ;;  %v703_v6 = vld [vmem:[#allocation2 + $0x60] ss:$8 sps:$4 sm:$0xff]   ;;  %v841_v8 = vmov 3   ;;  %v704_v9 = vld [vmem:[#allocation2 + $0x54] ss:$8 sps:$4 sm:$0xff]   ;;  %v66_v50 = vshrl.u32 %v65_v49, 7 }
  0x20   :  { %361 = vmatprep.subr.bf16.mxu0 %v698_v3  ;;  %v706_v10 = vld [vmem:[#allocation2 + $0x50] ss:$8 sps:$4 sm:$0xff]   ;;  %v707_v11 = vld [vmem:[#allocation2 + $0x44] ss:$8 sps:$4 sm:$0xff]   ;;  %v709_v12 = vld [vmem:[#allocation2 + $0x40] ss:$8 sps:$4 sm:$0xff]  }
  0x21   :  { %362 = vmatpush1.bf16.msra.mxu0 %v700_v4  ;;  %v710_v13 = vld [vmem:[#allocation2 + $0x34] ss:$8 sps:$4 sm:$0xff]   ;;  %v712_v14 = vld [vmem:[#allocation2 + $0x30] ss:$8 sps:$4 sm:$0xff]   ;;  %v713_v15 = vld [vmem:[#allocation2 + $0x24] ss:$8 sps:$4 sm:$0xff]  }
  0x22   :  { %363 = vmatprep.subr.bf16.mxu0 %v701_v5  ;;  %v715_v16 = vld [vmem:[#allocation2 + $0x20] ss:$8 sps:$4 sm:$0xff]   ;;  %v716_v17 = vld [vmem:[#allocation2 + $0x14] ss:$8 sps:$4 sm:$0xff]   ;;  %v718_v18 = vld [vmem:[#allocation2 + $0x10] ss:$8 sps:$4 sm:$0xff]  }
  0x23   :  { %694 = vset.pattern.permute.xlu0 %v840_v7  ;;  %696 = vset.pattern.permute.xlu1 %v841_v8  ;;  %v719_v19 = vld [vmem:[#allocation2 + $0x4] ss:$8 sps:$4 sm:$0xff]   ;;  %v746_v20 = vld [vmem:[#allocation5 + $0x78] sm:$0xff]   ;;  %v721_v22 = vld [vmem:[#allocation2] ss:$8 sps:$4 sm:$0xff]   ;;  %v67_v51 = vsub.s32 0, %v66_v50 }
  0x24   :  { %93 = vperm.xlu0 %694, %v56_v2   ;;  %135 = vperm.xlu1 %696, %v56_v2   ;;  %v747_v21 = vld [vmem:[#allocation5 + $0x38] sm:$0xff]   ;;  %v748_v23 = vld [vmem:[#allocation5 + $0x70] sm:$0xff]   ;;  %v750_v25 = vld [vmem:[#allocation5 + $0x68] sm:$0xff]   ;;  %v71_v52 = vsub.s32 1, %v66_v50 }
  0x25   :  { %364 = vmatpush1.bf16.msra.mxu0 %v703_v6  ;;  %660 = vmatprep.subr.bf16.mxu1 %v746_v20  ;;  %v749_v24 = vld [vmem:[#allocation5 + $0x30] sm:$0xff]   ;;  %v751_v28 = vld [vmem:[#allocation5 + $0x28] sm:$0xff]   ;;  %v752_v29 = vld [vmem:[#allocation5 + $0x60] sm:$0xff]  }
  0x26   :  { %365 = vmatprep.subr.bf16.mxu0 %v704_v9  ;;  %661 = vmatpush3.bf16.msra.mxu1 %v747_v21  ;;  %v722_v26 = vld [vmem:[#allocation2 + $0xf4] ss:$8 sps:$4 sm:$0xff]   ;;  %v724_v27 = vld [vmem:[#allocation2 + $0xf0] ss:$8 sps:$4 sm:$0xff]   ;;  %v725_v30 = vld [vmem:[#allocation2 + $0xe4] ss:$8 sps:$4 sm:$0xff]  }
  0x27   :  { %662 = vmatprep.subr.bf16.mxu1 %v748_v23  ;;  %v727_v31 = vld [vmem:[#allocation2 + $0xe0] ss:$8 sps:$4 sm:$0xff]   ;;  %v728_v32 = vld [vmem:[#allocation2 + $0xd4] ss:$8 sps:$4 sm:$0xff]   ;;  %v730_v36 = vld [vmem:[#allocation2 + $0xd0] ss:$8 sps:$4 sm:$0xff]  }
  0x28   :  { %697 = vset.pattern.permute.xlu0 %v841_v8  ;;  %v753_v33 = vld [vmem:[#allocation5 + $0x20] sm:$0xff]   ;;  %v754_v34 = vld [vmem:[#allocation5 + $0x58] sm:$0xff]   ;;  %v756_v37 = vld [vmem:[#allocation5 + $0x50] sm:$0xff]  }
  0x29   :  { %366 = vmatpush1.bf16.msra.mxu0 %v706_v10  ;;  %v755_v35 = vld [vmem:[#allocation5 + $0x18] sm:$0xff]   ;;  %v731_v38 = vld [vmem:[#allocation2 + $0xc4] ss:$8 sps:$4 sm:$0xff]   ;;  %v757_v39 = vld [vmem:[#allocation5 + $0x10] sm:$0xff]  }
  0x2a   :  { %367 = vmatprep.subr.bf16.mxu0 %v707_v11  ;;  %663 = vmatpush3.bf16.msra.mxu1 %v749_v24  ;;  %v733_v40 = vld [vmem:[#allocation2 + $0xc0] ss:$8 sps:$4 sm:$0xff]   ;;  %v734_v41 = vld [vmem:[#allocation2 + $0xb4] ss:$8 sps:$4 sm:$0xff]   ;;  %v736_v42 = vld [vmem:[#allocation2 + $0xb0] ss:$8 sps:$4 sm:$0xff]  }
  0x2b   :  { %664 = vmatprep.subr.bf16.mxu1 %v750_v25  ;;  %v737_v43 = vld [vmem:[#allocation2 + $0xa4] ss:$8 sps:$4 sm:$0xff]   ;;  %v739_v44 = vld [vmem:[#allocation2 + $0xa0] ss:$8 sps:$4 sm:$0xff]   ;;  %v740_v45 = vld [vmem:[#allocation2 + $0x94] ss:$8 sps:$4 sm:$0xff]  }
  0x2c   :  { %v742_v46 = vld [vmem:[#allocation2 + $0x90] ss:$8 sps:$4 sm:$0xff]   ;;  %v743_v47 = vld [vmem:[#allocation2 + $0x84] ss:$8 sps:$4 sm:$0xff]   ;;  %v745_v48 = vld [vmem:[#allocation2 + $0x80] ss:$8 sps:$4 sm:$0xff]  }
  0x2d   :  { %368 = vmatpush1.bf16.msra.mxu0 %v709_v12  ;;  %v58_v53 = vld [vmem:[%s917_s1] ss:$4 sm:$0x3]  ;;  %v608_v57 = vld [vmem:[%s917_s1 + $0x1] ss:$4 sm:$0x3] }
  0x2e   :  { %369 = vmatprep.subr.bf16.mxu0 %v710_v13  ;;  %665 = vmatpush3.bf16.msra.mxu1 %v751_v28  ;;  %v57_v54 = vld [vmem:[%s918_s2] sm:$0x3]  ;;  %v68_v55 = vrot.slane %v58_v53, %v67_v51  ;;  %v72_v56 = vrot.slane %v58_v53, %v71_v52  ;;  %v609_v59 = vld [vmem:[%s917_s1 + $0x2] ss:$4 sm:$0x3]  ;;  %v100_v2 = vrot.slane %v608_v57, %v67_v51  ;;  %v758_v28 = vld [vmem:[#allocation5 + $0x48] sm:$0xff]  }
  0x2f   :  { %666 = vmatprep.subr.bf16.mxu1 %v752_v29  ;;  %v81_v61 = vrot.slane %v57_v54, %v67_v51  ;;  %v85_v62 = vrot.slane %v57_v54, %v71_v52  ;;  %v610_v63 = vld [vmem:[%s917_s1 + $0x3] ss:$4 sm:$0x3]  ;;  %v104_v3 = vrot.slane %v608_v57, %v71_v52  ;;  %v121_v4 = vrot.slane %v609_v59, %v67_v51  ;;  %v759_v29 = vld [vmem:[#allocation5 + $0x8] sm:$0xff]  }
  0x30   :  { %v125_v5 = vrot.slane %v609_v59, %v71_v52  ;;  %v142_v6 = vrot.slane %v610_v63, %v67_v51  ;;  %v146_v7 = vrot.slane %v610_v63, %v71_v52 }
  0x31   :  { %370 = vmatpush1.bf16.msra.mxu0 %v712_v14 }
  0x32   :  { %371 = vmatprep.subr.bf16.mxu0 %v713_v15  ;;  %667 = vmatpush3.bf16.msra.mxu1 %v753_v33 }
  0x33   :  { %668 = vmatprep.subr.bf16.mxu1 %v754_v34 }
  0x35   :  { %372 = vmatpush1.bf16.msra.mxu0 %v715_v16 }
  0x36   :  { %373 = vmatprep.subr.bf16.mxu0 %v716_v17  ;;  %669 = vmatpush3.bf16.msra.mxu1 %v755_v35 }
  0x37   :  { %670 = vmatprep.subr.bf16.mxu1 %v756_v37 }
  0x39   :  { %374 = vmatpush1.bf16.msra.mxu0 %v718_v18 }
  0x3a   :  { %375 = vmatprep.subr.bf16.mxu0 %v719_v19  ;;  %671 = vmatpush3.bf16.msra.mxu1 %v757_v39 }
  0x3b   :  { %672 = vmatprep.subr.bf16.mxu1 %v758_v28 }
  0x3d   :  { %376 = vmatpush1.bf16.msra.mxu0 %v721_v22 }
  0x3e   :  { %377 = vmatprep.subr.bf16.mxu0 %v722_v26  ;;  %673 = vmatpush3.bf16.msra.mxu1 %v759_v29 }
  0x41   :  { %378 = vmatpush2.bf16.msra.mxu0 %v724_v27 }
  0x42   :  { %379 = vmatprep.subr.bf16.mxu0 %v725_v30  ;;  %v760_v30 = vld [vmem:[#allocation5 + $0x40] sm:$0xff]  }
  0x43   :  { %674 = vmatprep.subr.bf16.mxu1 %v760_v30 }
  0x45   :  { %380 = vmatpush2.bf16.msra.mxu0 %v727_v31  ;;  %v761_v31 = vld [vmem:[#allocation5] sm:$0xff]  }
  0x46   :  { %381 = vmatprep.subr.bf16.mxu0 %v728_v32  ;;  %675 = vmatpush3.bf16.msra.mxu1 %v761_v31  ;;  %v189_v32 = vld [vmem:[%s920_s4] sm:$0x3]  ;;  %s842_s4 = smov [#allocation7]  }
  0x47   :  { %v194_v33 = vrot.slane %v189_v32, %v67_v51  ;;  %v198_v34 = vrot.slane %v189_v32, %v71_v52  ;;  %s598_s26 = sshll.u32 %s842_s4, 4  ;;  %s599_s26 = int_to_ptr.vmem [resolvable:$true] %s598_s26 }
  0x48   :  { %p811_p11 = scmp.lt.s32.totalorder %s599_s26, %s599_s26 }
  0x49   :  { %382 = vmatpush2.bf16.msra.mxu0 %v730_v36 }
  0x4a   :  { %383 = vmatprep.subr.bf16.mxu0 %v731_v38 }
  0x4d   :  { %384 = vmatpush2.bf16.msra.mxu0 %v733_v40 }
  0x4e   :  { %385 = vmatprep.subr.bf16.mxu0 %v734_v41 }
  0x51   :  { %386 = vmatpush2.bf16.msra.mxu0 %v736_v42 }
  0x52   :  { %387 = vmatprep.subr.bf16.mxu0 %v737_v43 }
  0x55   :  { %388 = vmatpush2.bf16.msra.mxu0 %v739_v44 }
  0x56   :  { %389 = vmatprep.subr.bf16.mxu0 %v740_v45 }
  0x59   :  { %390 = vmatpush2.bf16.msra.mxu0 %v742_v46 }
  0x5a   :  { %391 = vmatprep.subr.bf16.mxu0 %v743_v47  ;;  %v643_v47 = vld [vmem:[%s922_s6] ss:$0 sm:$0xff]  ;;  %s806_s6 = scalar_lea.vmem %s599_s26, 64 }
  0x5b   :  { %p807_p10 = scmp.ne.s32.totalorder %s599_s26, %s806_s6  ;;  %p812_p12 = scmp.lt.s32.totalorder %s806_s6, %s806_s6 }
  0x5d   :  { %392 = vmatpush2.bf16.msra.mxu0 %v745_v48  ;;  %p813_p13 = por %p812_p12, %p811_p11 }
  0x5f   :  { %p814_p0 = pnand %p813_p13, %p807_p10 }
  0x9a   :  { %v62_v58 = vpop.permute.xlu0 %61  ;;  %v115_v60 = vpop.permute.xlu1 %114 }
  0x9b   :  { %v75_v0 = vmul.f32 %v68_v55, %v62_v58  ;;  %v76_v1 = vmul.f32 %v72_v56, %v62_v58  ;;  %v128_v14 = vmul.f32 %v121_v4, %v115_v60  ;;  %v129_v15 = vmul.f32 %v125_v5, %v115_v60 }
  0x9d   :  { %v88_v10 = vadd.f32 %v81_v61, %v75_v0  ;;  %v89_v11 = vadd.f32 %v85_v62, %v76_v1 }
  0x9f   :  { %v94_v8 = vpop.permute.xlu0 %93  ;;  %v136_v9 = vpop.permute.xlu1 %135 }
  0xa0   :  { %v107_v12 = vmul.f32 %v100_v2, %v94_v8  ;;  %v108_v13 = vmul.f32 %v104_v3, %v94_v8  ;;  %v149_v18 = vmul.f32 %v142_v6, %v136_v9  ;;  %v150_v19 = vmul.f32 %v146_v7, %v136_v9 }
  0xa2   :  { %v109_v16 = vadd.f32 %v107_v12, %v88_v10  ;;  %v110_v17 = vadd.f32 %v108_v13, %v89_v11 }
  0xa4   :  { %v130_v20 = vadd.f32 %v128_v14, %v109_v16  ;;  %v131_v21 = vadd.f32 %v129_v15, %v110_v17 }
  0xa6   :  { %v151_v22 = vadd.f32 %v149_v18, %v130_v20  ;;  %v152_v23 = vadd.f32 %v150_v19, %v131_v21 }
  0xa8   :  { %v153_v24 = vmax.f32 %v151_v22, 0.0  ;;  %v154_v25 = vmax.f32 %v152_v23, 0.0 }
  0xaa   :  { %v156_v26 = vpack.c.bf16 %v154_v25, %v154_v25  ;;  %v155_v27 = vpack.c.bf16 %v153_v24, %v153_v24 }
  0xac   :  { %393 = vmatprep.mubr.bf16.mxu0 %v156_v26 }
  0xad   :  { %394 = vmatmul.mubr.bf16.vlgmr.msra.gmra.mxu0 %v155_v27 }
 0x16d   :  { %v395_v35 = vpop.f32.mrf.mxu0 }
 0x16e   :  { %v396_v36 = vadd.f32 %v395_v35, %v194_v33 }
 0x16f   :  { %v397_v37 = vpop.f32.mrf.mxu0 }
 0x170   :  { %v398_v38 = vadd.f32 %v397_v37, %v198_v34  ;;  %v402_v39 = vmax.f32 %v396_v36, 0.0 }
 0x171   :  { %v399_v40 = vpop.f32.mrf.mxu0 }
 0x172   :  { %v403_v41 = vmax.f32 %v398_v38, 0.0  ;;  %v404_v44 = vpack.c.bf16 %v402_v39, %v402_v39 }
 0x173   :  { %v400_v42 = vpop.f32.mrf.mxu0 }
 0x174   :  { %v405_v43 = vpack.c.bf16 %v403_v41, %v403_v41 }
 0x176   :  { %573 = vmatprep.mubr.bf16.mxu1 %v405_v43 }
 0x177   :  { %574 = vmatmul.mubr.bf16.vlgmr.msra.gmra.mxu1 %v404_v44 }
 0x237   :  { %v676_v45 = vpop.f32.mrf.mxu1 }
 0x239   :  { %v677_v46 = vpop.f32.mrf.mxu1 }
 0x23a   :  { %v678_v48 = vadd.f32 %v677_v46, %v676_v45 }
 0x23b   :  { %v679_v49 = vpop.f32.mrf.mxu1 }
 0x23c   :  { %v576_v50 = vadd.f32 %v678_v48, %v643_v47 }
 0x23d   :  { %v680_v51 = vpop.f32.mrf.mxu1 }
 0x23e   :  { %581 = vmax.xlane.f32.xlu1 %v576_v50 }
 0x2c7   :  { %v582_v52 = vpop.xlane.xlu1 %581 }
 0x2c8   :  { %v583_v53 = vsub.f32 %v576_v50, %v582_v52 }
 0x2ca   :  { %v584_v54 = vmul.f32 1.442695, %v583_v53 }
 0x2cc   :  { %762 = vpow2.f32 %v584_v54 }
 0x2d9   :  { %v763_v55 = vpop.eup %762 }
 0x2da   :  { %586 = vadd.xlane.f32.xlu0 %v763_v55 }
 0x363   :  { %v587_v56 = vpop.xlane.xlu0 %586 }
 0x364   :  { %764 = vrcp.f32 %v587_v56 }
 0x371   :  { %v765_v57 = vpop.eup %764 }
 0x372   :  { %v589_v58 = vmul.f32 %v765_v57, %v763_v55 }
 0x374   :  { %v590_v59 = vpack.c.bf16 %v589_v58, %v589_v58 }
 0x376   :  { %591 = vst [vmem:[#allocation7] sm:$0xf] %v590_v59 }
 0x377   :  { %817 = shalt.err (!%p814_p0)
}
 0x378   :  { %601 = dma.vmem_to_hbm [thread:$0]  %s599_s26, 64, %s923_s7, [#allocation4]  }
 0x379   :  { %830 = dma.done.wait [#allocation4], 64  }
 0x37a   :  { %831 = vsyncadd [#allocation4], 4294967232 }
 0x37b   :  { %605 = vsyncpa [#allocation3], 1 }
 0x37c   :  { %606 = vsyncpa [#allocation6], 1 }
 0x37d   :  { %607 = vsyncpa [#allocation4], 1 }

</bundles_post_ra>
